<compile_context>
chip_gen: v6e
topology: v6e:2x2x1
jax: 0.10.0
libtpu: 0.0.40
codegen_flags: <defaults>
</compile_context>

<pallas_src>
import jax
import jax.numpy as jnp
from jax.experimental import pallas as pl
from jax.experimental.pallas import tpu as pltpu

# ---- sizes implied by the module ----
clicks_size = 8
water_state_dim = 8
d_dim = 64
IN_X = clicks_size                       # 8
IN_Y = water_state_dim                   # 8
H1, H2, H3 = d_dim, 2 * d_dim, 4 * d_dim  # 64, 128, 256
OUT_PAD = 128                            # lane-dense output width (sliced to 1 in wrapper)
BN_EPS = 1e-5
LEAKY_SLOPE = 0.2


def _leaky_relu(z):
    return jnp.where(z > 0, z, LEAKY_SLOPE * z)


def _bn_eval(z, gamma, beta, rmean, rvar):
    inv_std = jax.lax.rsqrt(rvar + BN_EPS)
    return (z - rmean) * (gamma * inv_std) + beta


def _fold_bn(w, b, gamma, beta, rmean, rvar, eps=BN_EPS):
    """Fold eval-mode BatchNorm1d into the preceding Linear (host-side, static)."""
    scale = gamma * jax.lax.rsqrt(rvar + eps)            # (1, out)
    return w * scale, (b - rmean) * scale + beta


def _round_up(n, m):
    return ((n + m - 1) // m) * m


# -----------------------------------------------------------------------------
# Kernel: one TB-row batch tile per grid step; all weights resident in VMEM.
# -----------------------------------------------------------------------------
def discriminator_kernel(
    x_ref, y_ref,
    w1x_ref, w1y_ref, b1_ref,
    w2_ref, b2_ref,          # BN2 folded in
    w3_ref, b3_ref,          # BN3 folded in
    w4r_ref, b4_ref,         # head weight as a (1, 256) row
    out_ref,
):
    x = x_ref[...]                                            # (TB, 8)
    y = y_ref[...]                                            # (TB, 8)

    # block 1: split Linear (x@W1x + y@W1y + b1) -> LeakyReLU
    h = (jnp.dot(x, w1x_ref[...], preferred_element_type=jnp.float32)
         + jnp.dot(y, w1y_ref[...], preferred_element_type=jnp.float32)
         + b1_ref[...])
    h = _leaky_relu(h)                                        # (TB, 64)

    # block 2: Linear (BN folded) -> LeakyReLU
    h = jnp.dot(h, w2_ref[...], preferred_element_type=jnp.float32) + b2_ref[...]
    h = _leaky_relu(h)                                        # (TB, 128)

    # block 3: Linear (BN folded) -> LeakyReLU
    h = jnp.dot(h, w3_ref[...], preferred_element_type=jnp.float32) + b3_ref[...]
    h = _leaky_relu(h)                                        # (TB, 256)

    # head: N=1 matmul as VPU multiply + XLU lane-reduction, then Sigmoid
    z = jnp.sum(h * w4r_ref[...], axis=-1, keepdims=True) + b4_ref[...]   # (TB, 1)
    sig = jax.nn.sigmoid(z)

    # lane-dense (unmasked) store; wrapper keeps column 0 only
    out_ref[...] = jnp.broadcast_to(sig, out_ref.shape)       # (TB, 128)


# -----------------------------------------------------------------------------
# Wrapper
# -----------------------------------------------------------------------------
def discriminator_forward(x, y, params, *, tb=1024):
    x = x.astype(jnp.float32)
    y = y.astype(jnp.float32)
    B = x.shape[0]

    # Host-side (static) parameter preprocessing: BN fold, W1 split, head row.
    w1x = params["w1"][:IN_X]                         # (8, 64)
    w1y = params["w1"][IN_X:]                         # (8, 64)
    b1 = params["b1"]                                 # (1, 64)
    w2f, b2f = _fold_bn(params["w2"], params["b2"], params["g2"], params["be2"],
                        params["rm2"], params["rv2"])
    w3f, b3f = _fold_bn(params["w3"], params["b3"], params["g3"], params["be3"],
                        params["rm3"], params["rv3"])
    w4r = params["w4"].reshape(1, H3)                 # (1, 256)
    b4 = params["b4"].reshape(1, 1)                   # (1, 1)

    # Batch tiling: TB rows per grid step (multiple of 8 sublanes), pad B if needed.
    TB = min(tb, _round_up(B, 8))
    Bp = _round_up(B, TB)
    if Bp != B:
        x = jnp.pad(x, ((0, Bp - B), (0, 0)))
        y = jnp.pad(y, ((0, Bp - B), (0, 0)))
    grid = (Bp // TB,)

    batch_map = lambda i: (i, 0)
    fixed_map = lambda i: (0, 0)

    in_specs = [
        pl.BlockSpec((TB, IN_X), batch_map),
        pl.BlockSpec((TB, IN_Y), batch_map),
        pl.BlockSpec(w1x.shape, fixed_map),
        pl.BlockSpec(w1y.shape, fixed_map),
        pl.BlockSpec(b1.shape, fixed_map),
        pl.BlockSpec(w2f.shape, fixed_map),
        pl.BlockSpec(b2f.shape, fixed_map),
        pl.BlockSpec(w3f.shape, fixed_map),
        pl.BlockSpec(b3f.shape, fixed_map),
        pl.BlockSpec(w4r.shape, fixed_map),
        pl.BlockSpec(b4.shape, fixed_map),
    ]
    out_specs = pl.BlockSpec((TB, OUT_PAD), batch_map)

    flops = 2 * Bp * (IN_X * H1 + IN_Y * H1 + H1 * H2 + H2 * H3 + H3)
    weight_bytes = 4 * (IN_X * H1 + IN_Y * H1 + H1
                        + H1 * H2 + H2 + H2 * H3 + H3 + H3 + 1)
    bytes_accessed = 4 * Bp * (IN_X + IN_Y + OUT_PAD) + weight_bytes

    out_padded = pl.pallas_call(
        discriminator_kernel,
        out_shape=jax.ShapeDtypeStruct((Bp, OUT_PAD), jnp.float32),
        grid=grid,
        in_specs=in_specs,
        out_specs=out_specs,
        compiler_params=pltpu.CompilerParams(dimension_semantics=("parallel",)),
        cost_estimate=pl.CostEstimate(
            flops=flops, transcendentals=Bp, bytes_accessed=bytes_accessed),
    )(x, y, w1x, w1y, b1, w2f, b2f, w3f, b3f, w4r, b4)

    return out_padded[:B, :1]


# -----------------------------------------------------------------------------
# Params + pure-JAX reference
# -----------------------------------------------------------------------------
def init_params(key):
    """Linear init mirroring nn.Linear defaults; BN with non-trivial stats to exercise folding."""
    def linear(key, fan_in, fan_out):
        k_w, k_b = jax.random.split(key)
        bound = 1.0 / jnp.sqrt(fan_in)
        w = jax.random.uniform(k_w, (fan_in, fan_out), jnp.float32, -bound, bound)
        b = jax.random.uniform(k_b, (1, fan_out), jnp.float32, -bound, bound)
        return w, b

    k1, k2, k3, k4, k5, k6 = jax.random.split(key, 6)
    w1, b1 = linear(k1, IN_X + IN_Y, H1)
    w2, b2 = linear(k2, H1, H2)
    w3, b3 = linear(k3, H2, H3)
    w4, b4 = linear(k4, H3, 1)

    def bn(key, dim):
        kg, kb, km, kv = jax.random.split(key, 4)
        gamma = jax.random.uniform(kg, (1, dim), jnp.float32, 0.5, 1.5)
        beta = 0.1 * jax.random.normal(kb, (1, dim), jnp.float32)
        rmean = 0.5 * jax.random.normal(km, (1, dim), jnp.float32)
        rvar = jax.random.uniform(kv, (1, dim), jnp.float32, 0.5, 1.5)
        return gamma, beta, rmean, rvar

    g2, be2, rm2, rv2 = bn(k5, H2)
    g3, be3, rm3, rv3 = bn(k6, H3)

    return dict(w1=w1, b1=b1,
                w2=w2, b2=b2, g2=g2, be2=be2, rm2=rm2, rv2=rv2,
                w3=w3, b3=b3, g3=g3, be3=be3, rm3=rm3, rv3=rv3,
                w4=w4, b4=b4)


def reference_forward(x, y, p):
    """Pure-JAX reference (unfolded BN, explicit concat) for correctness checking."""
    h = jnp.concatenate([x, y], axis=1)
    h = _leaky_relu(h @ p["w1"] + p["b1"])
    h = h @ p["w2"] + p["b2"]
    h = _leaky_relu(_bn_eval(h, p["g2"], p["be2"], p["rm2"], p["rv2"]))
    h = h @ p["w3"] + p["b3"]
    h = _leaky_relu(_bn_eval(h, p["g3"], p["be3"], p["rm3"], p["rv3"]))
    return jax.nn.sigmoid(h @ p["w4"] + p["b4"])


if __name__ == "__main__":
    key = jax.random.PRNGKey(0)
    k_p, k_x, k_y = jax.random.split(key, 3)

    B = 8
    params = init_params(k_p)
    x = jax.random.normal(k_x, (B, clicks_size), jnp.float32)
    y = jax.random.normal(k_y, (B, water_state_dim), jnp.float32)

    out = discriminator_forward(x, y, params)
    out = jax.block_until_ready(out)

    ref = reference_forward(x, y, params)
    assert out.shape == (B, 1)
    assert jnp.allclose(out, ref, atol=1e-4, rtol=1e-4), "mismatch vs JAX reference"

    print("KERNEL_OK")
</pallas_src>

<mosaic_0001>
module attributes {stable_mosaic.version = 11 : i64} {
  func.func @discriminator_kernel(%arg0: i32, %arg1: memref<8x8xf32, #tpu.memory_space<vmem>>, %arg2: memref<8x8xf32, #tpu.memory_space<vmem>>, %arg3: memref<8x64xf32, #tpu.memory_space<vmem>>, %arg4: memref<8x64xf32, #tpu.memory_space<vmem>>, %arg5: memref<1x64xf32, #tpu.memory_space<vmem>>, %arg6: memref<64x128xf32, #tpu.memory_space<vmem>>, %arg7: memref<1x128xf32, #tpu.memory_space<vmem>>, %arg8: memref<128x256xf32, #tpu.memory_space<vmem>>, %arg9: memref<1x256xf32, #tpu.memory_space<vmem>>, %arg10: memref<1x256xf32, #tpu.memory_space<vmem>>, %arg11: memref<1x1xf32, #tpu.memory_space<vmem>>, %arg12: memref<8x128xf32, #tpu.memory_space<vmem>>) attributes {dimension_semantics = [#tpu.dimension_semantics<parallel>], iteration_bounds = array<i64: 1>, scalar_prefetch = 0 : i64, scratch_operands = 0 : i64, tpu.core_type = #tpu.core_type<tc>, window_params = [{transform_indices = @transform_0, window_bounds = array<i64: 8, 8>}, {transform_indices = @transform_1, window_bounds = array<i64: 8, 8>}, {pipeline_mode = #tpu.pipeline_mode<synchronous>, transform_indices = @transform_2, window_bounds = array<i64: 8, 64>}, {pipeline_mode = #tpu.pipeline_mode<synchronous>, transform_indices = @transform_3, window_bounds = array<i64: 8, 64>}, {pipeline_mode = #tpu.pipeline_mode<synchronous>, transform_indices = @transform_4, window_bounds = array<i64: 1, 64>}, {pipeline_mode = #tpu.pipeline_mode<synchronous>, transform_indices = @transform_5, window_bounds = array<i64: 64, 128>}, {pipeline_mode = #tpu.pipeline_mode<synchronous>, transform_indices = @transform_6, window_bounds = array<i64: 1, 128>}, {pipeline_mode = #tpu.pipeline_mode<synchronous>, transform_indices = @transform_7, window_bounds = array<i64: 128, 256>}, {pipeline_mode = #tpu.pipeline_mode<synchronous>, transform_indices = @transform_8, window_bounds = array<i64: 1, 256>}, {pipeline_mode = #tpu.pipeline_mode<synchronous>, transform_indices = @transform_9, window_bounds = array<i64: 1, 256>}, {pipeline_mode = #tpu.pipeline_mode<synchronous>, transform_indices = @transform_10, window_bounds = array<i64: 1, 1>}, {transform_indices = @transform_11, window_bounds = array<i64: 8, 128>}]} {
    %c0 = arith.constant 0 : index
    %c0_0 = arith.constant 0 : index
    %0 = vector.load %arg1[%c0, %c0_0] : memref<8x8xf32, #tpu.memory_space<vmem>>, vector<8x8xf32>
    %c0_1 = arith.constant 0 : index
    %c0_2 = arith.constant 0 : index
    %1 = vector.load %arg2[%c0_1, %c0_2] : memref<8x8xf32, #tpu.memory_space<vmem>>, vector<8x8xf32>
    %c0_3 = arith.constant 0 : index
    %c0_4 = arith.constant 0 : index
    %2 = vector.load %arg3[%c0_3, %c0_4] : memref<8x64xf32, #tpu.memory_space<vmem>>, vector<8x64xf32>
    %cst = arith.constant dense<0.000000e+00> : vector<8x64xf32>
    %3 = tpu.matmul %0, %2, %cst {dimension_numbers = #tpu.dot_dimension_numbers<[1], [0], [0], [1], [0, 0, 1, 1], [], []>} : vector<8x8xf32>, vector<8x64xf32>, vector<8x64xf32> -> vector<8x64xf32>
    %c0_5 = arith.constant 0 : index
    %c0_6 = arith.constant 0 : index
    %4 = vector.load %arg4[%c0_5, %c0_6] : memref<8x64xf32, #tpu.memory_space<vmem>>, vector<8x64xf32>
    %cst_7 = arith.constant dense<0.000000e+00> : vector<8x64xf32>
    %5 = tpu.matmul %1, %4, %cst_7 {dimension_numbers = #tpu.dot_dimension_numbers<[1], [0], [0], [1], [0, 0, 1, 1], [], []>} : vector<8x8xf32>, vector<8x64xf32>, vector<8x64xf32> -> vector<8x64xf32>
    %6 = arith.addf %3, %5 : vector<8x64xf32>
    %c0_8 = arith.constant 0 : index
    %c0_9 = arith.constant 0 : index
    %7 = vector.load %arg5[%c0_8, %c0_9] : memref<1x64xf32, #tpu.memory_space<vmem>>, vector<1x64xf32>
    %8 = vector.broadcast %7 : vector<1x64xf32> to vector<8x64xf32>
    %9 = arith.addf %6, %8 : vector<8x64xf32>
    %cst_10 = arith.constant 0.000000e+00 : f32
    %10 = vector.broadcast %cst_10 : f32 to vector<8x64xf32>
    %11 = arith.cmpf ogt, %9, %10 : vector<8x64xf32>
    %cst_11 = arith.constant 2.000000e-01 : f32
    %12 = vector.broadcast %cst_11 : f32 to vector<8x64xf32>
    %13 = arith.mulf %12, %9 : vector<8x64xf32>
    %14 = arith.select %11, %9, %13 : vector<8x64xi1>, vector<8x64xf32>
    %c0_12 = arith.constant 0 : index
    %c0_13 = arith.constant 0 : index
    %15 = vector.load %arg6[%c0_12, %c0_13] : memref<64x128xf32, #tpu.memory_space<vmem>>, vector<64x128xf32>
    %cst_14 = arith.constant dense<0.000000e+00> : vector<8x128xf32>
    %16 = tpu.matmul %14, %15, %cst_14 {dimension_numbers = #tpu.dot_dimension_numbers<[1], [0], [0], [1], [0, 0, 1, 1], [], []>} : vector<8x64xf32>, vector<64x128xf32>, vector<8x128xf32> -> vector<8x128xf32>
    %c0_15 = arith.constant 0 : index
    %c0_16 = arith.constant 0 : index
    %17 = vector.load %arg7[%c0_15, %c0_16] : memref<1x128xf32, #tpu.memory_space<vmem>>, vector<1x128xf32>
    %18 = vector.broadcast %17 : vector<1x128xf32> to vector<8x128xf32>
    %19 = arith.addf %16, %18 : vector<8x128xf32>
    %cst_17 = arith.constant 0.000000e+00 : f32
    %20 = vector.broadcast %cst_17 : f32 to vector<8x128xf32>
    %21 = arith.cmpf ogt, %19, %20 : vector<8x128xf32>
    %cst_18 = arith.constant 2.000000e-01 : f32
    %22 = vector.broadcast %cst_18 : f32 to vector<8x128xf32>
    %23 = arith.mulf %22, %19 : vector<8x128xf32>
    %24 = arith.select %21, %19, %23 : vector<8x128xi1>, vector<8x128xf32>
    %c0_19 = arith.constant 0 : index
    %c0_20 = arith.constant 0 : index
    %25 = vector.load %arg8[%c0_19, %c0_20] : memref<128x256xf32, #tpu.memory_space<vmem>>, vector<128x256xf32>
    %cst_21 = arith.constant dense<0.000000e+00> : vector<8x256xf32>
    %26 = tpu.matmul %24, %25, %cst_21 {dimension_numbers = #tpu.dot_dimension_numbers<[1], [0], [0], [1], [0, 0, 1, 1], [], []>} : vector<8x128xf32>, vector<128x256xf32>, vector<8x256xf32> -> vector<8x256xf32>
    %c0_22 = arith.constant 0 : index
    %c0_23 = arith.constant 0 : index
    %27 = vector.load %arg9[%c0_22, %c0_23] : memref<1x256xf32, #tpu.memory_space<vmem>>, vector<1x256xf32>
    %28 = vector.broadcast %27 : vector<1x256xf32> to vector<8x256xf32>
    %29 = arith.addf %26, %28 : vector<8x256xf32>
    %cst_24 = arith.constant 0.000000e+00 : f32
    %30 = vector.broadcast %cst_24 : f32 to vector<8x256xf32>
    %31 = arith.cmpf ogt, %29, %30 : vector<8x256xf32>
    %cst_25 = arith.constant 2.000000e-01 : f32
    %32 = vector.broadcast %cst_25 : f32 to vector<8x256xf32>
    %33 = arith.mulf %32, %29 : vector<8x256xf32>
    %34 = arith.select %31, %29, %33 : vector<8x256xi1>, vector<8x256xf32>
    %c0_26 = arith.constant 0 : index
    %c0_27 = arith.constant 0 : index
    %35 = vector.load %arg10[%c0_26, %c0_27] : memref<1x256xf32, #tpu.memory_space<vmem>>, vector<1x256xf32>
    %36 = vector.broadcast %35 : vector<1x256xf32> to vector<8x256xf32>
    %37 = arith.mulf %34, %36 : vector<8x256xf32>
    %cst_28 = arith.constant dense<0.000000e+00> : vector<8xf32>
    %38 = vector.multi_reduction <add>, %37, %cst_28 [1] : vector<8x256xf32> to vector<8xf32>
    %39 = vector.shape_cast %38 : vector<8xf32> to vector<8x1xf32>
    %c0_29 = arith.constant 0 : index
    %c0_30 = arith.constant 0 : index
    %40 = vector.load %arg11[%c0_29, %c0_30] : memref<1x1xf32, #tpu.memory_space<vmem>>, vector<1x1xf32>
    %41 = vector.broadcast %40 : vector<1x1xf32> to vector<8x1xf32>
    %42 = arith.addf %39, %41 : vector<8x1xf32>
    %43 = arith.negf %42 : vector<8x1xf32>
    %44 = math.exp %43 : vector<8x1xf32>
    %cst_31 = arith.constant 1.000000e+00 : f32
    %45 = vector.broadcast %cst_31 : f32 to vector<8x1xf32>
    %46 = arith.addf %45, %44 : vector<8x1xf32>
    %47 = arith.divf %45, %46 : vector<8x1xf32>
    %48 = vector.shape_cast %47 : vector<8x1xf32> to vector<8x1xf32>
    %49 = vector.broadcast %48 : vector<8x1xf32> to vector<8x128xf32>
    %c0_32 = arith.constant 0 : index
    %c0_33 = arith.constant 0 : index
    %50 = vector.load %arg12[%c0_32, %c0_33] : memref<8x128xf32, #tpu.memory_space<vmem>>, vector<8x128xf32>
    tpu.vector_store %arg12[%c0_32, %c0_33], %49 {strides = array<i32>} : memref<8x128xf32, #tpu.memory_space<vmem>>, vector<8x128xf32>,
    return
  }
  func.func @transform_0(%arg0: i32) -> (i32, i32) {
    %c0_i32 = arith.constant 0 : i32
    %c0_i32_0 = arith.constant 0 : i32
    return %arg0, %c0_i32 : i32, i32
  }
  func.func @transform_1(%arg0: i32) -> (i32, i32) {
    %c0_i32 = arith.constant 0 : i32
    %c0_i32_0 = arith.constant 0 : i32
    return %arg0, %c0_i32 : i32, i32
  }
  func.func @transform_2(%arg0: i32) -> (i32, i32) {
    %c0_i32 = arith.constant 0 : i32
    %c0_i32_0 = arith.constant 0 : i32
    %c0_i32_1 = arith.constant 0 : i32
    return %c0_i32, %c0_i32_0 : i32, i32
  }
  func.func @transform_3(%arg0: i32) -> (i32, i32) {
    %c0_i32 = arith.constant 0 : i32
    %c0_i32_0 = arith.constant 0 : i32
    %c0_i32_1 = arith.constant 0 : i32
    return %c0_i32, %c0_i32_0 : i32, i32
  }
  func.func @transform_4(%arg0: i32) -> (i32, i32) {
    %c0_i32 = arith.constant 0 : i32
    %c0_i32_0 = arith.constant 0 : i32
    %c0_i32_1 = arith.constant 0 : i32
    return %c0_i32, %c0_i32_0 : i32, i32
  }
  func.func @transform_5(%arg0: i32) -> (i32, i32) {
    %c0_i32 = arith.constant 0 : i32
    %c0_i32_0 = arith.constant 0 : i32
    %c0_i32_1 = arith.constant 0 : i32
    return %c0_i32, %c0_i32_0 : i32, i32
  }
  func.func @transform_6(%arg0: i32) -> (i32, i32) {
    %c0_i32 = arith.constant 0 : i32
    %c0_i32_0 = arith.constant 0 : i32
    %c0_i32_1 = arith.constant 0 : i32
    return %c0_i32, %c0_i32_0 : i32, i32
  }
  func.func @transform_7(%arg0: i32) -> (i32, i32) {
    %c0_i32 = arith.constant 0 : i32
    %c0_i32_0 = arith.constant 0 : i32
    %c0_i32_1 = arith.constant 0 : i32
    return %c0_i32, %c0_i32_0 : i32, i32
  }
  func.func @transform_8(%arg0: i32) -> (i32, i32) {
    %c0_i32 = arith.constant 0 : i32
    %c0_i32_0 = arith.constant 0 : i32
    %c0_i32_1 = arith.constant 0 : i32
    return %c0_i32, %c0_i32_0 : i32, i32
  }
  func.func @transform_9(%arg0: i32) -> (i32, i32) {
    %c0_i32 = arith.constant 0 : i32
    %c0_i32_0 = arith.constant 0 : i32
    %c0_i32_1 = arith.constant 0 : i32
    return %c0_i32, %c0_i32_0 : i32, i32
  }
  func.func @transform_10(%arg0: i32) -> (i32, i32) {
    %c0_i32 = arith.constant 0 : i32
    %c0_i32_0 = arith.constant 0 : i32
    %c0_i32_1 = arith.constant 0 : i32
    return %c0_i32, %c0_i32_0 : i32, i32
  }
  func.func @transform_11(%arg0: i32) -> (i32, i32) {
    %c0_i32 = arith.constant 0 : i32
    %c0_i32_0 = arith.constant 0 : i32
    return %arg0, %c0_i32 : i32, i32
  }
}

</mosaic_0001>

<bundles_post_ra>
// kernel: tpu_custom_call.1
= control target key start
LH: loop header
LB: loop body
LE: loop exit
PB: predicated region body
PF: predicated region fallthrough
CT: control target
= control target key end

     0   :  { %s876_s0 = inlined_call_operand.hbm [shape: f32[8,8], index: 0, kind: input, shape index: {}]   ;;  %s877_s1 = inlined_call_operand.hbm [shape: f32[8,8], index: 1, kind: input, shape index: {}]   ;;  %s878_s2 = inlined_call_operand.hbm [shape: f32[8,64], index: 2, kind: input, shape index: {}]   ;;  %s879_s3 = inlined_call_operand.hbm [shape: f32[8,64], index: 3, kind: input, shape index: {}]   ;;  %s880_s4 = inlined_call_operand.vmem [shape: f32[1,64], index: 4, kind: input, shape index: {}]   ;;  %s881_s5 = inlined_call_operand.hbm [shape: f32[64,128], index: 5, kind: input, shape index: {}]   ;;  %s882_s6 = inlined_call_operand.vmem [shape: f32[1,128], index: 6, kind: input, shape index: {}]   ;;  %s883_s7 = inlined_call_operand.hbm [shape: f32[128,256], index: 7, kind: input, shape index: {}]   ;;  %s884_s8 = inlined_call_operand.vmem [shape: f32[1,256], index: 8, kind: input, shape index: {}]   ;;  %s885_s9 = inlined_call_operand.vmem [shape: f32[1,256], index: 9, kind: input, shape index: {}]   ;;  %s886_s10 = inlined_call_operand.<no memory space> [shape: f32[1,1], index: 10, kind: input, shape index: {}]   ;;  %s887_s11 = inlined_call_operand.hbm [shape: f32[8,128], index: 11, kind: output, shape index: {}]  }
   0x1   :  { %v16_v0 = vstv %s886_s10 }
   0x2   :  { %17 = vst [vmem:[#allocation2] sm:$0x1] %v16_v0 }
   0x3   :  { %18 = vsyncpa [#allocation4], 0 }
   0x4   :  { %19 = vsyncpa [#allocation7], 0 }
   0x5   :  { %20 = vsyncpa [#allocation10], 0 }
   0x6   :  { %21 = vsyncpa [#allocation13], 0 }
   0x7   :  { %22 = vsyncpa [#allocation5], 0  ;;  %s763_s19 = smov [#allocation6]   ;;  %s764_s21 = smov [#allocation9]  }
   0x8   :  { %s39_s20 = sshll.u32 %s763_s19, 4  ;;  %s59_s22 = sshll.u32 %s764_s21, 4  ;;  %s40_s20 = int_to_ptr.vmem [resolvable:$true] %s39_s20  ;;  %s60_s22 = int_to_ptr.vmem [resolvable:$true] %s59_s22 }
   0x9   :  { %s621_s23 = scalar_lea.vmem %s40_s20, 128  ;;  %p626_p1 = scmp.lt.s32.totalorder %s40_s20, %s40_s20 }
   0xa   :  { %p622_p0 = scmp.ne.s32.totalorder %s40_s20, %s621_s23  ;;  %p627_p2 = scmp.lt.s32.totalorder %s621_s23, %s621_s23 }
   0xc   :  { %p628_p3 = por %p627_p2, %p626_p1 }
   0xe   :  { %p629_p4 = pnand %p628_p3, %p622_p0 }
  0x10   :  { %632 = shalt.err (!%p629_p4)
}
  0x11   :  { %42 = dma.hbm_to_vmem [thread:$0]  %s877_s1, 128, %s40_s20, [#allocation7]  }
  0x12   :  { %s641_s25 = scalar_lea.vmem %s60_s22, 128  ;;  %p646_p6 = scmp.lt.s32.totalorder %s60_s22, %s60_s22 }
  0x13   :  { %p642_p5 = scmp.ne.s32.totalorder %s60_s22, %s641_s25  ;;  %p647_p7 = scmp.lt.s32.totalorder %s641_s25, %s641_s25 }
  0x15   :  { %p648_p8 = por %p647_p7, %p646_p6 }
  0x17   :  { %p649_p9 = pnand %p648_p8, %p642_p5 }
  0x19   :  { %652 = shalt.err (!%p649_p9)
}
  0x1a   :  { %62 = dma.hbm_to_vmem [thread:$0]  %s879_s3, 128, %s60_s22, [#allocation10]  }
  0x1b   :  { %s765_s28 = smov [#allocation3]   ;;  %s766_s30 = smov [#allocation8]  }
  0x1c   :  { %s29_s29 = sshll.u32 %s765_s28, 4  ;;  %s49_s12 = sshll.u32 %s766_s30, 4  ;;  %s30_s29 = int_to_ptr.vmem [resolvable:$true] %s29_s29  ;;  %s50_s12 = int_to_ptr.vmem [resolvable:$true] %s49_s12 }
  0x1d   :  { %s661_s13 = scalar_lea.vmem %s30_s29, 128  ;;  %p666_p11 = scmp.lt.s32.totalorder %s30_s29, %s30_s29 }
  0x1e   :  { %p662_p10 = scmp.ne.s32.totalorder %s30_s29, %s661_s13  ;;  %p667_p12 = scmp.lt.s32.totalorder %s661_s13, %s661_s13 }
  0x20   :  { %p668_p13 = por %p667_p12, %p666_p11 }
  0x22   :  { %p669_p0 = pnand %p668_p13, %p662_p10 }
  0x24   :  { %672 = shalt.err (!%p669_p0)
}
  0x25   :  { %32 = dma.hbm_to_vmem [thread:$0]  %s876_s0, 128, %s30_s29, [#allocation4]  }
  0x26   :  { %s681_s15 = scalar_lea.vmem %s50_s12, 128  ;;  %p686_p2 = scmp.lt.s32.totalorder %s50_s12, %s50_s12 }
  0x27   :  { %p682_p1 = scmp.ne.s32.totalorder %s50_s12, %s681_s15  ;;  %p687_p3 = scmp.lt.s32.totalorder %s681_s15, %s681_s15 }
  0x29   :  { %p688_p4 = por %p687_p3, %p686_p2 }
  0x2b   :  { %p689_p5 = pnand %p688_p4, %p682_p1 }
  0x2d   :  { %692 = shalt.err (!%p689_p5)
}
  0x2e   :  { %52 = dma.hbm_to_vmem [thread:$0]  %s878_s2, 128, %s50_s12, [#allocation7]  }
  0x2f   :  { %s767_s17 = smov [#allocation11]  }
  0x30   :  { %s70_s18 = sshll.u32 %s767_s17, 4  ;;  %s71_s18 = int_to_ptr.vmem [resolvable:$true] %s70_s18 }
  0x31   :  { %s701_s19 = scalar_lea.vmem %s71_s18, 1024  ;;  %p706_p7 = scmp.lt.s32.totalorder %s71_s18, %s71_s18 }
  0x32   :  { %p702_p6 = scmp.ne.s32.totalorder %s71_s18, %s701_s19  ;;  %p707_p8 = scmp.lt.s32.totalorder %s701_s19, %s701_s19 }
  0x34   :  { %p708_p9 = por %p707_p8, %p706_p7 }
  0x36   :  { %p709_p10 = pnand %p708_p9, %p702_p6 }
  0x38   :  { %712 = shalt.err (!%p709_p10)
}
  0x39   :  { %s768_s0 = smov 128   ;;  %s769_s20 = smov 8  }
  0x3a   :  { %76 = dma.hbm_to_vmem [thread:$0]  %s881_s5, 1024, %s71_s18, [#allocation10], %s768_s0, %s768_s0, %s769_s20  }
  0x3b   :  { %s770_s23 = smov [#allocation12]  }
  0x3c   :  { %s84_s10 = sshll.u32 %s770_s23, 4  ;;  %s85_s10 = int_to_ptr.vmem [resolvable:$true] %s84_s10 }
  0x3d   :  { %s721_s2 = scalar_lea.vmem %s85_s10, 4096  ;;  %p726_p12 = scmp.lt.s32.totalorder %s85_s10, %s85_s10 }
  0x3e   :  { %p722_p11 = scmp.ne.s32.totalorder %s85_s10, %s721_s2  ;;  %p727_p13 = scmp.lt.s32.totalorder %s721_s2, %s721_s2 }
  0x40   :  { %p728_p0 = por %p727_p13, %p726_p12 }
  0x42   :  { %p729_p1 = pnand %p728_p0, %p722_p11 }
  0x44   :  { %732 = shalt.err (!%p729_p1)
}
  0x45   :  { %s771_s24 = smov 256   ;;  %s772_s25 = smov 16  }
  0x46   :  { %90 = dma.hbm_to_vmem [thread:$0]  %s883_s7, 4096, %s85_s10, [#allocation13], %s771_s24, %s771_s24, %s772_s25  }
  0x47   :  { %753 = dma.done.wait [#allocation4], 128  }
  0x48   :  { %754 = vsyncadd [#allocation4], 4294967168 }
  0x49   :  { %755 = dma.done.wait [#allocation7], 256  }
  0x4a   :  { %756 = vsyncadd [#allocation7], 4294967040 }
  0x4b   :  { %757 = dma.done.wait [#allocation10], 1152  }
  0x4c   :  { %758 = vsyncadd [#allocation10], 4294966144 }
  0x4d   :  { %759 = dma.done.wait [#allocation13], 4096  }
  0x4e   :  { %760 = vsyncadd [#allocation13], 4294963200  ;;  %v773_v1 = vmov 0.0   ;;  %vm774_vm0 = vmmov 0   ;;  %vm119_vm1 = vcmask 64512   ;;  %v118_v2 = vld [vmem:[#allocation9] sm:$0xff]  ;;  %v403_v61 = vlaneseq }
  0x4f   :  { %565 = vmatprep.subr.mxu0 %v773_v1  ;;  %567 = vmatprep.mubr.msk.f32.mxu0 %vm774_vm0, %v773_v1  ;;  %v116_v3 = vld [vmem:[#allocation6] sm:$0xff]  ;;  %v117_v4 = vld [vmem:[#allocation8] sm:$0xff]  ;;  %v115_v5 = vld [vmem:[#allocation3] sm:$0xff]  ;;  %vm292_vm3 = vcmask 523264  }
  0x50   :  { %477 = vmatprep.mubr.f32.mxu1 %v773_v1  ;;  %566 = vmatpush3.msra.mxu0 %v118_v2  ;;  %v284_v6 = vld [vmem:[#allocation11 + $0x38] sm:$0xff]  ;;  %v283_v7 = vld [vmem:[#allocation11 + $0x30] sm:$0xff]  ;;  %v282_v8 = vld [vmem:[#allocation11 + $0x28] sm:$0xff]  ;;  %v404_v62 = vshrl.u32 %v403_v61, 7 }
  0x51   :  { %568 = vmatmul.mubr.msk.f32.vlgmr.msra.gmra.mxu0 %vm119_vm1, %v116_v3  ;;  %570 = vmatprep.subr.mxu0 %v773_v1  ;;  %v281_v9 = vld [vmem:[#allocation11 + $0x20] sm:$0xff]  ;;  %v280_v10 = vld [vmem:[#allocation11 + $0x18] sm:$0xff]  ;;  %v279_v11 = vld [vmem:[#allocation11 + $0x10] sm:$0xff] }
  0x52   :  { %571 = vmatpush3.msra.mxu0 %v117_v4  ;;  %572 = vmatprep.mubr.msk.f32.mxu0 %vm774_vm0, %v773_v1  ;;  %v278_v12 = vld [vmem:[#allocation11 + $0x8] sm:$0xff]  ;;  %v277_v13 = vld [vmem:[#allocation11] sm:$0xff]  ;;  %v400_v14 = vld [vmem:[#allocation12 + $0xf8] sm:$0xff]  ;;  %v405_v63 = vsub.s32 0, %v404_v62 }
  0x53   :  { %575 = vmatprep.subr.mxu0 %v773_v1  ;;  %v399_v15 = vld [vmem:[#allocation12 + $0xf0] sm:$0xff]  ;;  %v398_v16 = vld [vmem:[#allocation12 + $0xe8] sm:$0xff]  ;;  %413 = vmatprep.subr.mxu1 %v400_v14  ;;  %v397_v17 = vld [vmem:[#allocation12 + $0xe0] sm:$0xff] }
  0x54   :  { %414 = vmatpush1.msra.mxu1 %v399_v15  ;;  %v396_v18 = vld [vmem:[#allocation12 + $0xd8] sm:$0xff]  ;;  %v395_v19 = vld [vmem:[#allocation12 + $0xd0] sm:$0xff]  ;;  %v394_v20 = vld [vmem:[#allocation12 + $0xc8] sm:$0xff] }
  0x55   :  { %573 = vmatmul.mubr.msk.f32.vlgmr.msra.gmra.mxu0 %vm119_vm1, %v115_v5  ;;  %415 = vmatprep.subr.mxu1 %v398_v16  ;;  %v393_v21 = vld [vmem:[#allocation12 + $0xc0] sm:$0xff]  ;;  %v392_v22 = vld [vmem:[#allocation12 + $0xb8] sm:$0xff]  ;;  %v391_v23 = vld [vmem:[#allocation12 + $0xb0] sm:$0xff] }
  0x56   :  { %576 = vmatpush3.msra.mxu0 %v284_v6  ;;  %591 = vmatprep.mubr.msk.f32.mxu0 %vm774_vm0, %v773_v1  ;;  %v390_v24 = vld [vmem:[#allocation12 + $0xa8] sm:$0xff]  ;;  %v389_v25 = vld [vmem:[#allocation12 + $0xa0] sm:$0xff]  ;;  %v388_v26 = vld [vmem:[#allocation12 + $0x98] sm:$0xff] }
  0x57   :  { %577 = vmatprep.subr.mxu0 %v773_v1  ;;  %416 = vmatpush1.msra.mxu1 %v397_v17  ;;  %v387_v27 = vld [vmem:[#allocation12 + $0x90] sm:$0xff]  ;;  %v386_v28 = vld [vmem:[#allocation12 + $0x88] sm:$0xff]  ;;  %v385_v29 = vld [vmem:[#allocation12 + $0x80] sm:$0xff] }
  0x58   :  { %578 = vmatpush3.msra.mxu0 %v283_v7  ;;  %417 = vmatprep.subr.mxu1 %v396_v18  ;;  %v384_v30 = vld [vmem:[#allocation12 + $0x78] sm:$0xff]  ;;  %v383_v31 = vld [vmem:[#allocation12 + $0x70] sm:$0xff]  ;;  %v382_v32 = vld [vmem:[#allocation12 + $0x68] sm:$0xff]  ;;  %v775_v18 = vmov 0  }
  0x59   :  { %579 = vmatprep.subr.mxu0 %v773_v1  ;;  %418 = vmatpush1.msra.mxu1 %v395_v19  ;;  %v381_v33 = vld [vmem:[#allocation12 + $0x60] sm:$0xff]  ;;  %v380_v34 = vld [vmem:[#allocation12 + $0x58] sm:$0xff]  ;;  %v379_v35 = vld [vmem:[#allocation12 + $0x50] sm:$0xff] }
  0x5a   :  { %580 = vmatpush3.msra.mxu0 %v282_v8  ;;  %419 = vmatprep.subr.mxu1 %v394_v20  ;;  %v378_v36 = vld [vmem:[#allocation12 + $0x48] sm:$0xff]  ;;  %v377_v37 = vld [vmem:[#allocation12 + $0x40] sm:$0xff]  ;;  %v376_v38 = vld [vmem:[#allocation12 + $0x38] sm:$0xff] }
  0x5b   :  { %581 = vmatprep.subr.mxu0 %v773_v1  ;;  %420 = vmatpush1.msra.mxu1 %v393_v21  ;;  %v375_v39 = vld [vmem:[#allocation12 + $0x30] sm:$0xff]  ;;  %v547_v43 = vld [vmem:[%s880_s4] ss:$0 sm:$0xff]  ;;  %v374_v49 = vld [vmem:[#allocation12 + $0x28] sm:$0xff] }
  0x5c   :  { %582 = vmatpush3.msra.mxu0 %v281_v9  ;;  %421 = vmatprep.subr.mxu1 %v392_v22  ;;  %v373_v50 = vld [vmem:[#allocation12 + $0x20] sm:$0xff]  ;;  %v372_v51 = vld [vmem:[#allocation12 + $0x18] sm:$0xff]  ;;  %v371_v52 = vld [vmem:[#allocation12 + $0x10] sm:$0xff] }
  0x5d   :  { %583 = vmatprep.subr.mxu0 %v773_v1  ;;  %422 = vmatpush1.msra.mxu1 %v391_v23  ;;  %v370_v53 = vld [vmem:[#allocation12 + $0x8] sm:$0xff]  ;;  %v369_v54 = vld [vmem:[#allocation12] sm:$0xff]  ;;  %v548_v55 = vld [vmem:[%s882_s6] ss:$0 sm:$0xff] }
  0x5e   :  { %584 = vmatpush3.msra.mxu0 %v280_v10  ;;  %423 = vmatprep.subr.mxu1 %v390_v24  ;;  %v401_v0 = vld [vmem:[%s884_s8] sm:$0x3]  ;;  %s776_s8 = smov [#allocation14]  }
  0x5f   :  { %585 = vmatprep.subr.mxu0 %v773_v1  ;;  %424 = vmatpush1.msra.mxu1 %v389_v25  ;;  %v406_v2 = vrot.slane %v401_v0, %v405_v63  ;;  %v490_v6 = vld [vmem:[%s885_s9] sm:$0x3]  ;;  %s533_s9 = sshll.u32 %s776_s8, 4  ;;  %s534_s9 = int_to_ptr.vmem [resolvable:$true] %s533_s9 }
  0x60   :  { %586 = vmatpush3.msra.mxu0 %v279_v11  ;;  %425 = vmatprep.subr.mxu1 %v388_v26  ;;  %v495_v10 = vrot.slane %v490_v6, %v405_v63  ;;  %v550_v19 = vld [vmem:[#allocation2] ss:$0 sm:$0xff]  ;;  %s733_s13 = scalar_lea.vmem %s534_s9, 128  ;;  %p738_p3 = scmp.lt.s32.totalorder %s534_s9, %s534_s9 }
  0x61   :  { %587 = vmatprep.subr.mxu0 %v773_v1  ;;  %426 = vmatpush1.msra.mxu1 %v387_v27  ;;  %p734_p2 = scmp.ne.s32.totalorder %s534_s9, %s733_s13  ;;  %p739_p4 = scmp.lt.s32.totalorder %s733_s13, %s733_s13 }
  0x62   :  { %588 = vmatpush3.msra.mxu0 %v278_v12  ;;  %427 = vmatprep.subr.mxu1 %v386_v28 }
  0x63   :  { %589 = vmatprep.subr.mxu0 %v773_v1  ;;  %428 = vmatpush1.msra.mxu1 %v385_v29  ;;  %v409_v1 = vsub.s32 1, %v404_v62  ;;  %p740_p5 = por %p739_p4, %p738_p3 }
  0x64   :  { %590 = vmatpush3.msra.mxu0 %v277_v13  ;;  %429 = vmatprep.subr.mxu1 %v384_v30 }
  0x65   :  { %430 = vmatpush1.msra.mxu1 %v383_v31  ;;  %v410_v3 = vrot.slane %v401_v0, %v409_v1  ;;  %v499_v11 = vrot.slane %v490_v6, %v409_v1  ;;  %608 = vset.pattern.permute.xlu0 %v775_v18  ;;  %p741_p6 = pnand %p740_p5, %p734_p2 }
  0x66   :  { %431 = vmatprep.subr.mxu1 %v382_v32 }
  0x67   :  { %432 = vmatpush1.msra.mxu1 %v381_v33 }
  0x68   :  { %433 = vmatprep.subr.mxu1 %v380_v34 }
  0x69   :  { %434 = vmatpush1.msra.mxu1 %v379_v35 }
  0x6a   :  { %435 = vmatprep.subr.mxu1 %v378_v36 }
  0x6b   :  { %436 = vmatpush1.msra.mxu1 %v377_v37 }
  0x6c   :  { %437 = vmatprep.subr.mxu1 %v376_v38 }
  0x6d   :  { %438 = vmatpush1.msra.mxu1 %v375_v39 }
  0x6e   :  { %439 = vmatprep.subr.mxu1 %v374_v49 }
  0x6f   :  { %440 = vmatpush1.msra.mxu1 %v373_v50 }
  0x70   :  { %441 = vmatprep.subr.mxu1 %v372_v51 }
  0x71   :  { %442 = vmatpush1.msra.mxu1 %v371_v52 }
  0x72   :  { %443 = vmatprep.subr.mxu1 %v370_v53 }
  0x73   :  { %444 = vmatpush1.msra.mxu1 %v369_v54 }
 0x111   :  { %v189_v40 = vpop.f32.mrf.mxu0 }
 0x113   :  { %v569_v41 = vpop.f32.mrf.mxu0 }
 0x115   :  { %v262_v42 = vpop.f32.mrf.mxu0 }
 0x116   :  { %v263_v44 = vadd.f32 %v262_v42, %v189_v40 }
 0x117   :  { %v574_v45 = vpop.f32.mrf.mxu0 }
 0x118   :  { %v273_v46 = vadd.f32 %v547_v43, %v263_v44 }
 0x11a   :  { %vm274_vm2 = vcmp.gt.f32.partialorder %v273_v46, 0.0  ;;  %v275_v47 = vmul.f32 0.2, %v273_v46 }
 0x11c   :  { %v276_v48 = vsel %vm274_vm2, %v273_v46, %v275_v47 }
 0x11d   :  { %592 = vmatmul.mubr.msk.f32.vlgmr.msra.gmra.mxu0 %vm292_vm3, %v276_v48 }
 0x1dd   :  { %v362_v56 = vpop.f32.mrf.mxu0 }
 0x1de   :  { %v363_v57 = vadd.f32 %v548_v55, %v362_v56 }
 0x1df   :  { %v593_v58 = vpop.f32.mrf.mxu0 }
 0x1e0   :  { %v367_v59 = vmul.f32 0.2, %v363_v57  ;;  %vm366_vm4 = vcmp.gt.f32.partialorder %v363_v57, 0.0 }
 0x1e2   :  { %v368_v60 = vsel %vm366_vm4, %v363_v57, %v367_v59 }
 0x1e3   :  { %478 = vmatmul.mubr.f32.vlgmr.msra.gmra.mxu1 %v368_v60 }
 0x2a3   :  { %v479_v4 = vpop.f32.mrf.mxu1 }
 0x2a4   :  { %v480_v5 = vadd.f32 %v479_v4, %v406_v2 }
 0x2a5   :  { %v481_v7 = vpop.f32.mrf.mxu1 }
 0x2a6   :  { %vm484_vm5 = vcmp.gt.f32.partialorder %v480_v5, 0.0  ;;  %v486_v8 = vmul.f32 0.2, %v480_v5  ;;  %v482_v9 = vadd.f32 %v481_v7, %v410_v3 }
 0x2a8   :  { %vm485_vm6 = vcmp.gt.f32.partialorder %v482_v9, 0.0  ;;  %v487_v12 = vmul.f32 0.2, %v482_v9  ;;  %v488_v13 = vsel %vm484_vm5, %v480_v5, %v486_v8 }
 0x2a9   :  { %v502_v15 = vmul.f32 %v495_v10, %v488_v13 }
 0x2aa   :  { %v489_v14 = vsel %vm485_vm6, %v482_v9, %v487_v12 }
 0x2ab   :  { %v503_v16 = vmul.f32 %v499_v11, %v489_v14 }
 0x2ad   :  { %v504_v17 = vadd.f32 %v503_v16, %v502_v15 }
 0x2af   :  { %505 = vadd.xlane.f32.xlu0 %v504_v17 }
 0x338   :  { %v506_v20 = vpop.xlane.xlu0 %505 }
 0x339   :  { %v514_v21 = vadd.f32 %v550_v19, %v506_v20 }
 0x33b   :  { %v551_v22 = vmul.f32 -1.442695, %v514_v21 }
 0x33d   :  { %609 = vpow2.f32 %v551_v22 }
 0x34a   :  { %v610_v23 = vpop.eup %609 }
 0x34b   :  { %v518_v24 = vadd.f32 1.0, %v610_v23 }
 0x34d   :  { %611 = vrcp.f32 %v518_v24 }
 0x35a   :  { %v612_v25 = vpop.eup %611 }
 0x35b   :  { %523 = vperm.xlu0 %608, %v612_v25  }
 0x3d6   :  { %v524_v26 = vpop.permute.xlu0 %523 }
 0x3d7   :  { %526 = vst [vmem:[#allocation14] sm:$0xff] %v524_v26 }
 0x3d8   :  { %744 = shalt.err (!%p741_p6)
}
 0x3d9   :  { %536 = dma.vmem_to_hbm [thread:$0]  %s534_s9, 128, %s887_s11, [#allocation5]  }
 0x3da   :  { %761 = dma.done.wait [#allocation5], 128  }
 0x3db   :  { %762 = vsyncadd [#allocation5], 4294967168 }
 0x3dc   :  { %540 = vsyncpa [#allocation4], 1 }
 0x3dd   :  { %541 = vsyncpa [#allocation7], 1 }
 0x3de   :  { %542 = vsyncpa [#allocation10], 1 }
 0x3df   :  { %543 = vsyncpa [#allocation13], 1 }
 0x3e0   :  { %544 = vsyncpa [#allocation5], 1 }

</bundles_post_ra>
